<compile_context>
chip_gen: v6e
topology: v6e:2x2x1
jax: 0.10.0
libtpu: 0.0.40
codegen_flags: <defaults>
</compile_context>

<pallas_src>
import functools

import jax
import jax.numpy as jnp
import numpy as np
from jax.experimental import pallas as pl
from jax.experimental.pallas import tpu as pltpu

NUM_LEVELS = 5     # embedding table rows
NUM_FEATURES = 20  # 15 index cols + 5 object-value cols
NUM_ACTIONS = 3    # left / stay / right


def _round_up(n, m):
    return ((n + m - 1) // m) * m


def _dqn_attn_kernel(emb_ref, x_ref, out_ref):
    """emb_ref: (5,)  f32 SMEM (scalar prefetch)
       x_ref:   (20, TB) f32 VMEM  — features on sublanes, batch on lanes
       out_ref: (3,  TB) f32 VMEM  — rows are [q_left, q_stay, q_right]"""
    x = x_ref[...]                              # (20, TB)
    obj = x[15:20, :]                           # (5, TB) object_values
    idx = x[0:15, :].astype(jnp.int32)          # (15, TB) trunc cast == torch .long()

    e0 = emb_ref[0]
    e1 = emb_ref[1]
    e2 = emb_ref[2]
    e3 = emb_ref[3]
    e4 = emb_ref[4]
    # 5-entry embedding lookup as a nested select chain (VPU only, no gather).
    # Indices outside [0,5) fall through to emb[0]; the torch reference would be
    # out-of-bounds on such input, so this only diverges on invalid indices.
    w = jnp.where(idx == 1, e1,
        jnp.where(idx == 2, e2,
        jnp.where(idx == 3, e3,
        jnp.where(idx == 4, e4, e0))))           # (15, TB) f32

    # Per-action attention sums over the 5 feature rows (sublane reduction),
    # written straight into the corresponding output row (lane-dense stores).
    out_ref[0:1, :] = jnp.sum(w[0:5, :] * obj, axis=0, keepdims=True)    # q_left
    out_ref[1:2, :] = jnp.sum(w[5:10, :] * obj, axis=0, keepdims=True)   # q_stay
    out_ref[2:3, :] = jnp.sum(w[10:15, :] * obj, axis=0, keepdims=True)  # q_right


@functools.partial(jax.jit, static_argnames=("block_b",))
def dqn_forward(x, emb_weight, *, block_b=2048):
    """x: (B, 20) float; emb_weight: (NUM_LEVELS, 1) float. Returns (B, 3) f32.

    block_b: batch-tile size (multiple of 128). 2048 works for all of
    v5e/v6e/v7x (20*2048*4 B = 160 KiB per input buffer, double-buffered),
    and is clamped down for small B.
    """
    B = x.shape[0]
    tb = min(block_b, _round_up(max(B, 1), 128))   # lane tile, multiple of 128
    b_pad = _round_up(B, tb)

    x_t = jnp.transpose(x.astype(jnp.float32))                   # (20, B)
    if b_pad != B:
        # padded columns: idx -> 0 (valid), obj -> 0  => q == 0, later sliced off
        x_t = jnp.pad(x_t, ((0, 0), (0, b_pad - B)))

    emb_flat = emb_weight.reshape(NUM_LEVELS).astype(jnp.float32)

    grid_spec = pltpu.PrefetchScalarGridSpec(
        num_scalar_prefetch=1,
        grid=(b_pad // tb,),
        in_specs=[pl.BlockSpec((NUM_FEATURES, tb), lambda i, emb: (0, i))],
        out_specs=pl.BlockSpec((NUM_ACTIONS, tb), lambda i, emb: (0, i)),
    )

    out_t = pl.pallas_call(
        _dqn_attn_kernel,
        out_shape=jax.ShapeDtypeStruct((NUM_ACTIONS, b_pad), jnp.float32),
        grid_spec=grid_spec,
        compiler_params=pltpu.CompilerParams(
            dimension_semantics=("parallel",)),    # shard batch tiles across TCs
    )(emb_flat, x_t)

    return jnp.transpose(out_t[:, :B])                            # (B, 3)


def _reference_forward(x, emb_weight):
    """Pure-JAX reference mirroring the PyTorch forward exactly."""
    x = x.astype(jnp.float32)
    left = x[:, 0:5].astype(jnp.int32)
    stay = x[:, 5:10].astype(jnp.int32)
    right = x[:, 10:15].astype(jnp.int32)
    obj = x[:, 15:20]
    table = emb_weight.reshape(-1).astype(jnp.float32)
    lw, sw, rw = table[left], table[stay], table[right]
    all_attn = jnp.stack([lw * obj, sw * obj, rw * obj], axis=1)  # (B, 3, 5)
    q_flat = all_attn.reshape(-1, 5).sum(axis=1, keepdims=True)
    return q_flat.reshape(-1, 3)


if __name__ == "__main__":
    key = jax.random.PRNGKey(0)
    k_emb, k_idx1, k_obj1, k_idx2, k_obj2 = jax.random.split(key, 5)

    # Parameters actually used by forward(): the 5x1 embedding table.
    emb_weight = jax.random.normal(k_emb, (NUM_LEVELS, 1), dtype=jnp.float32)
    # fc1 / out / MSELoss exist in __init__ but are never used by forward().

    # --- small per-step-style batch (B=8; kernel cost here is pure dispatch
    #     overhead — at this size the right call is to fuse/batch upstream) ---
    B1 = 8
    idx_part = jax.random.randint(k_idx1, (B1, 15), 0, NUM_LEVELS).astype(jnp.float32)
    obj_part = jax.random.normal(k_obj1, (B1, 5), dtype=jnp.float32)
    x1 = jnp.concatenate([idx_part, obj_part], axis=1)            # (8, 20)

    q1 = dqn_forward(x1, emb_weight)
    jax.block_until_ready(q1)
    np.testing.assert_allclose(np.asarray(q1),
                               np.asarray(_reference_forward(x1, emb_weight)),
                               rtol=1e-6, atol=1e-6)
    assert q1.shape == (B1, 3)

    # --- batch that exercises padding + a multi-step grid (block_b=128) ---
    B2 = 300
    idx_part2 = jax.random.randint(k_idx2, (B2, 15), 0, NUM_LEVELS).astype(jnp.float32)
    obj_part2 = jax.random.normal(k_obj2, (B2, 5), dtype=jnp.float32)
    x2 = jnp.concatenate([idx_part2, obj_part2], axis=1)          # (300, 20)

    q2 = dqn_forward(x2, emb_weight, block_b=128)
    jax.block_until_ready(q2)
    np.testing.assert_allclose(np.asarray(q2),
                               np.asarray(_reference_forward(x2, emb_weight)),
                               rtol=1e-6, atol=1e-6)
    assert q2.shape == (B2, 3)

    print("KERNEL_OK")
</pallas_src>

<mosaic_0001>
module attributes {stable_mosaic.version = 11 : i64} {
  func.func @_dqn_attn_kernel(%arg0: i32, %arg1: memref<5xf32, #tpu.memory_space<smem>>, %arg2: memref<20x128xf32, #tpu.memory_space<vmem>>, %arg3: memref<3x128xf32, #tpu.memory_space<vmem>>) attributes {dimension_semantics = [#tpu.dimension_semantics<parallel>], iteration_bounds = array<i64: 1>, scalar_prefetch = 1 : i64, scratch_operands = 0 : i64, tpu.core_type = #tpu.core_type<tc>, window_params = [{transform_indices = @transform_0, window_bounds = array<i64: 20, 128>}, {transform_indices = @transform_1, window_bounds = array<i64: 3, 128>}]} {
    %c0 = arith.constant 0 : index
    %c0_0 = arith.constant 0 : index
    %0 = vector.load %arg2[%c0, %c0_0] : memref<20x128xf32, #tpu.memory_space<vmem>>, vector<20x128xf32>
    %1 = vector.extract_strided_slice %0 {offsets = [15, 0], sizes = [5, 128], strides = [1, 1]} : vector<20x128xf32> to vector<5x128xf32>
    %2 = vector.extract_strided_slice %0 {offsets = [0, 0], sizes = [15, 128], strides = [1, 1]} : vector<20x128xf32> to vector<15x128xf32>
    %3 = arith.fptosi %2 : vector<15x128xf32> to vector<15x128xi32>
    %c0_1 = arith.constant 0 : index
    %4 = memref.load %arg1[%c0_1] : memref<5xf32, #tpu.memory_space<smem>>
    %c1 = arith.constant 1 : index
    %5 = memref.load %arg1[%c1] : memref<5xf32, #tpu.memory_space<smem>>
    %c2 = arith.constant 2 : index
    %6 = memref.load %arg1[%c2] : memref<5xf32, #tpu.memory_space<smem>>
    %c3 = arith.constant 3 : index
    %7 = memref.load %arg1[%c3] : memref<5xf32, #tpu.memory_space<smem>>
    %c4 = arith.constant 4 : index
    %8 = memref.load %arg1[%c4] : memref<5xf32, #tpu.memory_space<smem>>
    %c1_i32 = arith.constant 1 : i32
    %9 = vector.broadcast %c1_i32 : i32 to vector<15x128xi32>
    %10 = arith.cmpi eq, %3, %9 : vector<15x128xi32>
    %c2_i32 = arith.constant 2 : i32
    %11 = vector.broadcast %c2_i32 : i32 to vector<15x128xi32>
    %12 = arith.cmpi eq, %3, %11 : vector<15x128xi32>
    %c3_i32 = arith.constant 3 : i32
    %13 = vector.broadcast %c3_i32 : i32 to vector<15x128xi32>
    %14 = arith.cmpi eq, %3, %13 : vector<15x128xi32>
    %c4_i32 = arith.constant 4 : i32
    %15 = vector.broadcast %c4_i32 : i32 to vector<15x128xi32>
    %16 = arith.cmpi eq, %3, %15 : vector<15x128xi32>
    %17 = vector.broadcast %8 : f32 to vector<15x128xf32>
    %18 = vector.broadcast %4 : f32 to vector<15x128xf32>
    %19 = arith.select %16, %17, %18 : vector<15x128xi1>, vector<15x128xf32>
    %20 = vector.broadcast %7 : f32 to vector<15x128xf32>
    %21 = arith.select %14, %20, %19 : vector<15x128xi1>, vector<15x128xf32>
    %22 = vector.broadcast %6 : f32 to vector<15x128xf32>
    %23 = arith.select %12, %22, %21 : vector<15x128xi1>, vector<15x128xf32>
    %24 = vector.broadcast %5 : f32 to vector<15x128xf32>
    %25 = arith.select %10, %24, %23 : vector<15x128xi1>, vector<15x128xf32>
    %26 = vector.extract_strided_slice %25 {offsets = [0, 0], sizes = [5, 128], strides = [1, 1]} : vector<15x128xf32> to vector<5x128xf32>
    %27 = arith.mulf %26, %1 : vector<5x128xf32>
    %cst = arith.constant dense<0.000000e+00> : vector<128xf32>
    %28 = vector.multi_reduction <add>, %27, %cst [0] : vector<5x128xf32> to vector<128xf32>
    %29 = vector.shape_cast %28 : vector<128xf32> to vector<1x128xf32>
    %c0_2 = arith.constant 0 : index
    %c0_3 = arith.constant 0 : index
    %30 = vector.load %arg3[%c0_2, %c0_3] : memref<3x128xf32, #tpu.memory_space<vmem>>, vector<1x128xf32>
    tpu.vector_store %arg3[%c0_2, %c0_3], %29 {strides = array<i32>} : memref<3x128xf32, #tpu.memory_space<vmem>>, vector<1x128xf32>,
    %31 = vector.extract_strided_slice %25 {offsets = [5, 0], sizes = [5, 128], strides = [1, 1]} : vector<15x128xf32> to vector<5x128xf32>
    %32 = arith.mulf %31, %1 : vector<5x128xf32>
    %cst_4 = arith.constant dense<0.000000e+00> : vector<128xf32>
    %33 = vector.multi_reduction <add>, %32, %cst_4 [0] : vector<5x128xf32> to vector<128xf32>
    %34 = vector.shape_cast %33 : vector<128xf32> to vector<1x128xf32>
    %c1_5 = arith.constant 1 : index
    %c0_6 = arith.constant 0 : index
    %35 = vector.load %arg3[%c1_5, %c0_6] : memref<3x128xf32, #tpu.memory_space<vmem>>, vector<1x128xf32>
    tpu.vector_store %arg3[%c1_5, %c0_6], %34 {strides = array<i32>} : memref<3x128xf32, #tpu.memory_space<vmem>>, vector<1x128xf32>,
    %36 = vector.extract_strided_slice %25 {offsets = [10, 0], sizes = [5, 128], strides = [1, 1]} : vector<15x128xf32> to vector<5x128xf32>
    %37 = arith.mulf %36, %1 : vector<5x128xf32>
    %cst_7 = arith.constant dense<0.000000e+00> : vector<128xf32>
    %38 = vector.multi_reduction <add>, %37, %cst_7 [0] : vector<5x128xf32> to vector<128xf32>
    %39 = vector.shape_cast %38 : vector<128xf32> to vector<1x128xf32>
    %c2_8 = arith.constant 2 : index
    %c0_9 = arith.constant 0 : index
    %40 = vector.load %arg3[%c2_8, %c0_9] : memref<3x128xf32, #tpu.memory_space<vmem>>, vector<1x128xf32>
    tpu.vector_store %arg3[%c2_8, %c0_9], %39 {strides = array<i32>} : memref<3x128xf32, #tpu.memory_space<vmem>>, vector<1x128xf32>,
    return
  }
  func.func @transform_0(%arg0: i32, %arg1: memref<5xf32, #tpu.memory_space<smem>>) -> (i32, i32) {
    %c0_i32 = arith.constant 0 : i32
    %c0_i32_0 = arith.constant 0 : i32
    return %c0_i32, %arg0 : i32, i32
  }
  func.func @transform_1(%arg0: i32, %arg1: memref<5xf32, #tpu.memory_space<smem>>) -> (i32, i32) {
    %c0_i32 = arith.constant 0 : i32
    %c0_i32_0 = arith.constant 0 : i32
    return %c0_i32, %arg0 : i32, i32
  }
}

</mosaic_0001>

<bundles_post_ra>
// kernel: dqn_forward.1
= control target key start
LH: loop header
LB: loop body
LE: loop exit
PB: predicated region body
PF: predicated region fallthrough
CT: control target
= control target key end

     0   :  { %s182_s0 = inlined_call_operand.vmem [shape: f32[5], index: 0, kind: input, shape index: {}]   ;;  %s183_s1 = inlined_call_operand.vmem [shape: f32[20,128], index: 1, kind: input, shape index: {}]   ;;  %s184_s2 = inlined_call_operand.vmem [shape: f32[3,128], index: 2, kind: output, shape index: {}]  }
   0x1   :  { %s7_s11 = sshll.u32 %s182_s0, 4  ;;  %s8_s11 = int_to_ptr.vmem [resolvable:$true] %s7_s11 }
   0x2   :  { %s115_s12 = scalar_lea.vmem %s8_s11, 16  ;;  %p120_p1 = scmp.lt.s32.totalorder %s8_s11, %s8_s11 }
   0x3   :  { %p116_p0 = scmp.ne.s32.totalorder %s8_s11, %s115_s12  ;;  %p121_p2 = scmp.lt.s32.totalorder %s115_s12, %s115_s12 }
   0x5   :  { %p122_p3 = por %p121_p2, %p120_p1 }
   0x7   :  { %p123_p4 = pnand %p122_p3, %p116_p0 }
   0x9   :  { %126 = shalt.err (!%p123_p4)  }
   0xa   :  { %s129_s13 = smov [#allocation3]  }
   0xb   :  { %10 = dma.vmem_to_smem %s8_s11, 16, %s129_s13, [#allocation2] }
   0xc   :  { %127 = dma.done.wait [#allocation2], 16 }
   0xd   :  { %128 = vsyncadd [#allocation2], 4294967280 }
   0xe   :  { %12 = sfence }
   0xf   :  { %v15_v0 = vld [vmem:[%s183_s1] sm:$0xff]  ;;  %v16_v1 = vld [vmem:[%s183_s1 + $0x8] sm:$0xff]  ;;  %s154_s0 = sld [smem:[#allocation3]]  ;;  %v17_v4 = vld [vmem:[%s183_s1 + $0x10] sm:$0xf]  ;;  %vm48_vm0 = vcmask 1040384  }
  0x10   :  { %v110_v2 = vtrunc.f32 %v15_v0  ;;  %v112_v3 = vtrunc.f32 %v16_v1  ;;  %s156_s18 = sld [smem:[#allocation3 + $0x1]]  ;;  %v49_v5 = vrot.slane %v16_v1, 7  ;;  %v50_v6 = vrot.slane %v17_v4, 7 }
  0x11   :  { %s161_s21 = sld [smem:[#allocation3 + $0x2]]  ;;  %vm63_vm1 = vcmask 1045504   ;;  %v64_v9 = vrot.slane %v16_v1, 2  ;;  %v65_v11 = vrot.slane %v17_v4, 2  ;;  %vm73_vm2 = vcmask 1042432  }
  0x12   :  { %s163_s22 = sld [smem:[#allocation3 + $0x3]]  ;;  %v111_v7 = vcvt.f32.s32 %v110_v2  ;;  %v113_v8 = vcvt.f32.s32 %v112_v3  ;;  %v51_v10 = vsel %vm48_vm0, %v49_v5, %v50_v6  ;;  %v86_v12 = vrot.slane %v16_v1, 5 }
  0x13   :  { %s109_s23 = sld [smem:[#allocation3 + $0x4]]  ;;  %v87_v14 = vrot.slane %v17_v4, 5  ;;  %v66_v22 = vsel %vm63_vm1, %v64_v9, %v65_v11  ;;  %vm54_vm11 = vcmask 1044480  }
  0x14   :  { %vm31_vm3 = vcmp.eq.s32.totalorder %v111_v7, 4  ;;  %vm32_vm4 = vcmp.eq.s32.totalorder %v113_v8, 4  ;;  %vm25_vm5 = vcmp.eq.s32.totalorder %v111_v7, 1  ;;  %vm29_vm6 = vcmp.eq.s32.totalorder %v111_v7, 3 }
  0x15   :  { %v34_v13 = vstv %s154_s0  ;;  %vm30_vm7 = vcmp.eq.s32.totalorder %v113_v8, 3  ;;  %vm27_vm8 = vcmp.eq.s32.totalorder %v111_v7, 2  ;;  %vm28_vm9 = vcmp.eq.s32.totalorder %v113_v8, 2 }
  0x16   :  { %v43_v19 = vstv %s156_s18  ;;  %vm26_vm10 = vcmp.eq.s32.totalorder %v113_v8, 1  ;;  %v88_v24 = vsel %vm73_vm2, %v86_v12, %v87_v14 }
  0x17   :  { %v40_v17 = vstv %s161_s21 }
  0x18   :  { %v37_v15 = vstv %s163_s22 }
  0x19   :  { %v33_v16 = vstv %s109_s23 }
  0x1a   :  { %v35_v18 = vsel %vm31_vm3, %v33_v16, %v34_v13  ;;  %v36_v20 = vsel %vm32_vm4, %v33_v16, %v34_v13 }
  0x1b   :  { %v38_v21 = vsel %vm29_vm6, %v37_v15, %v35_v18  ;;  %v39_v23 = vsel %vm30_vm7, %v37_v15, %v36_v20 }
  0x1c   :  { %v41_v25 = vsel %vm27_vm8, %v40_v17, %v38_v21  ;;  %v42_v26 = vsel %vm28_vm9, %v40_v17, %v39_v23 }
  0x1d   :  { %v44_v27 = vsel %vm25_vm5, %v43_v19, %v41_v25  ;;  %v45_v28 = vsel %vm26_vm10, %v43_v19, %v42_v26 }
  0x1e   :  { %v53_v29 = vmul.f32 %v51_v10, %v44_v27  ;;  %v69_v30 = vmul.f32 %v66_v22, %v44_v27  ;;  %v70_v31 = vmul.f32 %v65_v11, %v45_v28  ;;  %v90_v32 = vmul.f32 %v88_v24, %v45_v28 }
  0x20   :  { %v55_v33 = vsel %vm54_vm11, %v53_v29, 0.0  ;;  %v74_v34 = vrot.slane %v69_v30, 5  ;;  %v75_v35 = vrot.slane %v70_v31, 5  ;;  %v92_v36 = vrot.slane %v90_v32, 2 }
  0x21   :  { %v56_v37 = vrot.slane %v55_v33, 4 }
  0x22   :  { %v76_v38 = vsel %vm73_vm2, %v74_v34, %v75_v35  ;;  %v94_v39 = vsel %vm54_vm11, %v92_v36, 0.0 }
  0x23   :  { %v57_v40 = vadd.f32 %v56_v37, %v55_v33  ;;  %v78_v41 = vsel %vm54_vm11, %v76_v38, 0.0  ;;  %v95_v42 = vrot.slane %v94_v39, 4 }
  0x24   :  { %v79_v43 = vrot.slane %v78_v41, 4 }
  0x25   :  { %v58_v44 = vrot.slane %v57_v40, 2  ;;  %v96_v45 = vadd.f32 %v95_v42, %v94_v39 }
  0x26   :  { %v80_v46 = vadd.f32 %v79_v43, %v78_v41 }
  0x27   :  { %v59_v47 = vadd.f32 %v58_v44, %v57_v40  ;;  %v97_v48 = vrot.slane %v96_v45, 2 }
  0x28   :  { %v81_v49 = vrot.slane %v80_v46, 2 }
  0x29   :  { %v60_v50 = vrot.slane %v59_v47, 1  ;;  %v98_v51 = vadd.f32 %v97_v48, %v96_v45 }
  0x2a   :  { %v82_v52 = vadd.f32 %v81_v49, %v80_v46 }
  0x2b   :  { %v61_v53 = vadd.f32 %v60_v50, %v59_v47  ;;  %v99_v54 = vrot.slane %v98_v51, 1 }
  0x2c   :  { %v83_v55 = vrot.slane %v82_v52, 1 }
  0x2d   :  { %62 = vst [vmem:[%s184_s2] sm:$0x1] %v61_v53  ;;  %v100_v56 = vadd.f32 %v99_v54, %v98_v51 }
  0x2e   :  { %v84_v57 = vadd.f32 %v83_v55, %v82_v52 }
  0x2f   :  { %101 = vst [vmem:[%s184_s2 + $0x2] sm:$0x1] %v100_v56 }
  0x30   :  { %85 = vst [vmem:[%s184_s2 + $0x1] sm:$0x1] %v84_v57 }

</bundles_post_ra>
